<compile_context>
chip_gen: v7x
topology: tpu7x:2x2x1
jax: 0.10.0
libtpu: 0.0.40
codegen_flags: <defaults>
</compile_context>

<pallas_src>
import functools

import jax
import jax.numpy as jnp
from jax.experimental import pallas as pl
from jax.experimental.pallas import tpu as pltpu


def _round_up(x, m):
    return ((x + m - 1) // m) * m


def _pre_encoder_kernel(x_ref, *args, L, eps, P, B, bt, B_pad):
    """Fused (BatchNorm1d -> Linear) x L stack.

    Grid = (L + 1, num_batch_tiles); phase axis is outermost.
      phase 0      : accumulate sum / sum-of-squares of x
      phase l + 1  : fold BN_l into Linear_l (at batch tile 0), then for every
                     batch tile:  y = a_l @ W_eff + b_eff  (bf16 MXU, f32 acc),
                     accumulate next layer's stats, store y to VMEM scratch
                     (or to the HBM output for the last layer).
    """
    # ---- unpack refs: L * (gamma, beta, W^T, bias), output, scratch -------
    layer_params = []
    i = 0
    for _ in range(L):
        layer_params.append(tuple(args[i:i + 4]))
        i += 4
    o_ref = args[i]
    i += 1
    act_ref, sum_ref, sq_ref, wfold_ref, bfold_ref = args[i:i + 5]

    p = pl.program_id(0)      # phase
    b = pl.program_id(1)      # batch tile
    needs_row_mask = (B_pad != B)

    def row_mask(start):
        rows = start + jax.lax.broadcasted_iota(jnp.int32, (bt, 1), 0)
        return rows < B

    # ---------------- phase 0: statistics of the network input ------------
    @pl.when(p == 0)
    def _stats_of_x():
        @pl.when(b == 0)
        def _init():
            sum_ref[...] = jnp.zeros_like(sum_ref)
            sq_ref[...] = jnp.zeros_like(sq_ref)

        xv = x_ref[...].astype(jnp.float32)      # padded rows/cols are zero
        sum_ref[...] += jnp.sum(xv, axis=0, keepdims=True)
        sq_ref[...] += jnp.sum(xv * xv, axis=0, keepdims=True)

    # -------- phase l+1: fold BN_l into Linear_l and apply it --------------
    for l in range(L):
        gamma_ref, beta_ref, wt_ref, bias_ref = layer_params[l]
        is_last = (l == L - 1)

        @pl.when(p == l + 1)
        def _apply(l=l, gamma_ref=gamma_ref, beta_ref=beta_ref,
                   wt_ref=wt_ref, bias_ref=bias_ref, is_last=is_last):
            # ---- one-time fold (first batch tile of this phase) ----------
            @pl.when(b == 0)
            def _fold():
                inv_b = jnp.float32(1.0 / B)
                mean = sum_ref[...] * inv_b                       # (1, P)
                var = jnp.maximum(sq_ref[...] * inv_b - mean * mean, 0.0)
                scale = gamma_ref[...] * jax.lax.rsqrt(var + eps)  # (1, P)
                wt = wt_ref[...]                                   # (P, P) f32
                # scale the F_in rows of W^T once (BN folded into the weight)
                scale_cols = jnp.broadcast_to(scale, (P, P)).T
                wfold_ref[...] = (wt * scale_cols).astype(wfold_ref.dtype)
                # fold mean / beta / bias into a single bias row
                shifted = beta_ref[...] - mean * scale             # (1, P)
                shifted_cols = jnp.broadcast_to(shifted, (P, P)).T
                bfold_ref[...] = bias_ref[...] + jnp.sum(
                    wt * shifted_cols, axis=0, keepdims=True)
                # reset accumulators for the NEXT layer's statistics
                sum_ref[...] = jnp.zeros_like(sum_ref)
                sq_ref[...] = jnp.zeros_like(sq_ref)

            # ---- per batch tile: matmul with folded weights ---------------
            start = pl.multiple_of(b * bt, bt)
            if l == 0:
                a = x_ref[...]                                     # (bt, P)
            else:
                a = act_ref[(l - 1) % 2, pl.ds(start, bt), :]      # bf16
            y = jnp.dot(a.astype(jnp.bfloat16), wfold_ref[...],
                        preferred_element_type=jnp.float32)        # f32 acc
            y = y + bfold_ref[...]
            if needs_row_mask:
                # zero padded batch rows so they never pollute statistics
                y = jnp.where(row_mask(start), y, 0.0)

            if is_last:
                o_ref[...] = y.astype(o_ref.dtype)
            else:
                sum_ref[...] += jnp.sum(y, axis=0, keepdims=True)
                sq_ref[...] += jnp.sum(y * y, axis=0, keepdims=True)
                act_ref[l % 2, pl.ds(start, bt), :] = y.astype(act_ref.dtype)


def pre_encoder_forward(x, params, *, eps=1e-5, batch_tile=None):
    """Run the full pre_encoder stack as a single fused Pallas kernel."""
    B, F0 = x.shape
    L = len(params)
    feats = [F0] + [int(p["w"].shape[0]) for p in params]
    assert int(params[0]["w"].shape[1]) == F0

    # Uniform feature padding (lane-dense, MXU friendly).
    P = max(_round_up(f, 128) for f in feats)

    # Batch tiling: multiples of 8 sublanes, up to 256 rows per tile.
    if batch_tile is None:
        bt = 256 if B >= 256 else _round_up(B, 8)
    else:
        bt = batch_tile
        assert bt % 8 == 0, "batch_tile must be a multiple of 8"
    nbt = -(-B // bt)
    B_pad = nbt * bt

    # ---- zero-pad activations and parameters to the uniform shapes -------
    xp = jnp.zeros((B_pad, P), jnp.float32).at[:B, :F0].set(
        x.astype(jnp.float32))
    flat_inputs = [xp]
    for li, layer in enumerate(params):
        f_in, f_out = feats[li], feats[li + 1]
        g = jnp.zeros((1, P), jnp.float32).at[0, :f_in].set(layer["gamma"])
        be = jnp.zeros((1, P), jnp.float32).at[0, :f_in].set(layer["beta"])
        wt = jnp.zeros((P, P), jnp.float32).at[:f_in, :f_out].set(
            layer["w"].T)                         # pre-transposed: [f_in, f_out]
        bb = jnp.zeros((1, P), jnp.float32).at[0, :f_out].set(layer["b"])
        flat_inputs += [g, be, wt, bb]

    grid = (L + 1, nbt)
    in_specs = [pl.BlockSpec((bt, P), lambda p, b: (b, 0))]       # x
    for _ in range(L):
        in_specs += [pl.BlockSpec((1, P), lambda p, b: (0, 0)),   # gamma
                     pl.BlockSpec((1, P), lambda p, b: (0, 0)),   # beta
                     pl.BlockSpec((P, P), lambda p, b: (0, 0)),   # W^T
                     pl.BlockSpec((1, P), lambda p, b: (0, 0))]   # bias
    # Output tile index only depends on the batch tile; it is only written in
    # the final phase (earlier writebacks are overwritten, intermediates never
    # touch HBM).
    out_spec = pl.BlockSpec((bt, P), lambda p, b: (b, 0))

    scratch = [
        pltpu.VMEM((2, B_pad, P), jnp.bfloat16),   # ping-pong activations
        pltpu.VMEM((1, P), jnp.float32),           # per-feature sum
        pltpu.VMEM((1, P), jnp.float32),           # per-feature sum of squares
        pltpu.VMEM((P, P), jnp.bfloat16),          # folded weight
        pltpu.VMEM((1, P), jnp.float32),           # folded bias
    ]

    # Explicit VMEM budget (sized for v7x's smaller scoped VMEM as well).
    need = (2 * B_pad * P * 2 + P * P * 2 + 3 * P * 4      # scratch
            + 2 * 2 * bt * P * 4                           # x/out double-buf
            + 2 * L * (P * P + 3 * P) * 4)                 # resident params
    vmem_limit = int(min(96 * 2 ** 20, max(32 * 2 ** 20, int(1.25 * need))))

    kernel = functools.partial(_pre_encoder_kernel, L=L, eps=eps, P=P,
                               B=B, bt=bt, B_pad=B_pad)

    out = pl.pallas_call(
        kernel,
        out_shape=jax.ShapeDtypeStruct((B_pad, P), jnp.float32),
        grid_spec=pltpu.PrefetchScalarGridSpec(
            num_scalar_prefetch=0,
            grid=grid,
            in_specs=in_specs,
            out_specs=out_spec,
            scratch_shapes=scratch),
        compiler_params=pltpu.CompilerParams(
            # Both axes must stay sequential: batch tiles accumulate into the
            # shared BN-stats scratch and read the previous phase's scratch.
            dimension_semantics=("arbitrary", "arbitrary"),
            vmem_limit_bytes=vmem_limit),
    )(*flat_inputs)

    return out[:B, :feats[-1]]


def init_pre_encoder_params(key, num_layers):
    """PyTorch-layout parameters: gamma/beta [f_in], W [f_out, f_in], b [f_out]."""
    params = []
    for i in range(len(num_layers) - 1):
        f_in, f_out = num_layers[i], num_layers[i + 1]
        key, k_g, k_b, k_w, k_bias = jax.random.split(key, 5)
        gamma = 1.0 + 0.1 * jax.random.normal(k_g, (f_in,), jnp.float32)
        beta = 0.1 * jax.random.normal(k_b, (f_in,), jnp.float32)
        bound = 1.0 / (f_in ** 0.5)
        w = jax.random.uniform(k_w, (f_out, f_in), jnp.float32, -bound, bound)
        b = jax.random.uniform(k_bias, (f_out,), jnp.float32, -bound, bound)
        params.append({"gamma": gamma, "beta": beta, "w": w, "b": b})
    return params


def pre_encoder_reference(x, params, eps=1e-5):
    """Pure-JAX f32 reference (train-mode BatchNorm1d + Linear per layer)."""
    for layer in params:
        mean = jnp.mean(x, axis=0, keepdims=True)
        var = jnp.mean((x - mean) ** 2, axis=0, keepdims=True)
        x_hat = (x - mean) / jnp.sqrt(var + eps)
        x_bn = x_hat * layer["gamma"][None, :] + layer["beta"][None, :]
        x = x_bn @ layer["w"].T + layer["b"][None, :]
    return x


if __name__ == "__main__":
    # Small shapes consistent with the module: num_layers = [32, 64, 16].
    # batch=20 with batch_tile=8 exercises multiple batch tiles AND the
    # padded-row masking path (20 is not a multiple of 8).
    num_layers = [32, 64, 16]
    batch = 20

    key = jax.random.PRNGKey(0)
    key, k_x = jax.random.split(key)
    x = jax.random.normal(k_x, (batch, num_layers[0]), jnp.float32)
    params = init_pre_encoder_params(key, num_layers)

    fwd = jax.jit(functools.partial(pre_encoder_forward, batch_tile=8))
    out = jax.block_until_ready(fwd(x, params))

    ref = pre_encoder_reference(x, params)
    assert out.shape == (batch, num_layers[-1]), out.shape
    max_err = float(jnp.max(jnp.abs(out - ref)))
    # bf16 MXU operands (f32 accumulation) vs the f32 reference -> loosened
    # tolerance, per the review's correctness note.
    assert jnp.allclose(out, ref, atol=5e-2, rtol=5e-2), \
        f"max abs err {max_err}"

    print("KERNEL_OK")
</pallas_src>

<mosaic_0001>
module attributes {stable_mosaic.version = 11 : i64} {
  func.func @_pre_encoder_kernel(%arg0: i32, %arg1: i32, %arg2: memref<8x128xf32, #tpu.memory_space<vmem>>, %arg3: memref<1x128xf32, #tpu.memory_space<vmem>>, %arg4: memref<1x128xf32, #tpu.memory_space<vmem>>, %arg5: memref<128x128xf32, #tpu.memory_space<vmem>>, %arg6: memref<1x128xf32, #tpu.memory_space<vmem>>, %arg7: memref<1x128xf32, #tpu.memory_space<vmem>>, %arg8: memref<1x128xf32, #tpu.memory_space<vmem>>, %arg9: memref<128x128xf32, #tpu.memory_space<vmem>>, %arg10: memref<1x128xf32, #tpu.memory_space<vmem>>, %arg11: memref<8x128xf32, #tpu.memory_space<vmem>>, %arg12: memref<2x24x128xbf16, #tpu.memory_space<vmem>>, %arg13: memref<1x128xf32, #tpu.memory_space<vmem>>, %arg14: memref<1x128xf32, #tpu.memory_space<vmem>>, %arg15: memref<128x128xbf16, #tpu.memory_space<vmem>>, %arg16: memref<1x128xf32, #tpu.memory_space<vmem>>) attributes {dimension_semantics = [#tpu.dimension_semantics<arbitrary>, #tpu.dimension_semantics<arbitrary>], iteration_bounds = array<i64: 3, 3>, scalar_prefetch = 0 : i64, scratch_operands = 5 : i64, tpu.core_type = #tpu.core_type<tc>, window_params = [{transform_indices = @transform_0, window_bounds = array<i64: 8, 128>}, {pipeline_mode = #tpu.pipeline_mode<synchronous>, transform_indices = @transform_1, window_bounds = array<i64: 1, 128>}, {pipeline_mode = #tpu.pipeline_mode<synchronous>, transform_indices = @transform_2, window_bounds = array<i64: 1, 128>}, {pipeline_mode = #tpu.pipeline_mode<synchronous>, transform_indices = @transform_3, window_bounds = array<i64: 128, 128>}, {pipeline_mode = #tpu.pipeline_mode<synchronous>, transform_indices = @transform_4, window_bounds = array<i64: 1, 128>}, {pipeline_mode = #tpu.pipeline_mode<synchronous>, transform_indices = @transform_5, window_bounds = array<i64: 1, 128>}, {pipeline_mode = #tpu.pipeline_mode<synchronous>, transform_indices = @transform_6, window_bounds = array<i64: 1, 128>}, {pipeline_mode = #tpu.pipeline_mode<synchronous>, transform_indices = @transform_7, window_bounds = array<i64: 128, 128>}, {pipeline_mode = #tpu.pipeline_mode<synchronous>, transform_indices = @transform_8, window_bounds = array<i64: 1, 128>}, {transform_indices = @transform_9, window_bounds = array<i64: 8, 128>}]} {
    %c0_i32 = arith.constant 0 : i32
    %0 = arith.cmpi eq, %arg0, %c0_i32 : i32
    %1 = arith.extui %0 : i1 to i32
    %c0_i32_0 = arith.constant 0 : i32
    %2 = arith.cmpi ne, %1, %c0_i32_0 : i32
    scf.if %2 {
      %c0_i32_3 = arith.constant 0 : i32
      %9 = arith.cmpi eq, %arg1, %c0_i32_3 : i32
      %10 = arith.extui %9 : i1 to i32
      %c0_i32_4 = arith.constant 0 : i32
      %11 = arith.cmpi ne, %10, %c0_i32_4 : i32
      scf.if %11 {
        %cst_15 = arith.constant 0.000000e+00 : f32
        %24 = vector.broadcast %cst_15 : f32 to vector<1x128xf32>
        %c0_16 = arith.constant 0 : index
        %c0_17 = arith.constant 0 : index
        %25 = vector.load %arg13[%c0_16, %c0_17] : memref<1x128xf32, #tpu.memory_space<vmem>>, vector<1x128xf32>
        tpu.vector_store %arg13[%c0_16, %c0_17], %24 {strides = array<i32>} : memref<1x128xf32, #tpu.memory_space<vmem>>, vector<1x128xf32>,
        %cst_18 = arith.constant 0.000000e+00 : f32
        %26 = vector.broadcast %cst_18 : f32 to vector<1x128xf32>
        %c0_19 = arith.constant 0 : index
        %c0_20 = arith.constant 0 : index
        %27 = vector.load %arg14[%c0_19, %c0_20] : memref<1x128xf32, #tpu.memory_space<vmem>>, vector<1x128xf32>
        tpu.vector_store %arg14[%c0_19, %c0_20], %26 {strides = array<i32>} : memref<1x128xf32, #tpu.memory_space<vmem>>, vector<1x128xf32>,
      } else {
      }
      %c0 = arith.constant 0 : index
      %c0_5 = arith.constant 0 : index
      %12 = vector.load %arg2[%c0, %c0_5] : memref<8x128xf32, #tpu.memory_space<vmem>>, vector<8x128xf32>
      %c0_6 = arith.constant 0 : index
      %c0_7 = arith.constant 0 : index
      %13 = vector.load %arg13[%c0_6, %c0_7] : memref<1x128xf32, #tpu.memory_space<vmem>>, vector<1x128xf32>
      %cst = arith.constant dense<0.000000e+00> : vector<128xf32>
      %14 = vector.multi_reduction <add>, %12, %cst [0] : vector<8x128xf32> to vector<128xf32>
      %15 = vector.shape_cast %14 : vector<128xf32> to vector<1x128xf32>
      %16 = arith.addf %13, %15 : vector<1x128xf32>
      %c0_8 = arith.constant 0 : index
      %c0_9 = arith.constant 0 : index
      %17 = vector.load %arg13[%c0_8, %c0_9] : memref<1x128xf32, #tpu.memory_space<vmem>>, vector<1x128xf32>
      tpu.vector_store %arg13[%c0_8, %c0_9], %16 {strides = array<i32>} : memref<1x128xf32, #tpu.memory_space<vmem>>, vector<1x128xf32>,
      %c0_10 = arith.constant 0 : index
      %c0_11 = arith.constant 0 : index
      %18 = vector.load %arg14[%c0_10, %c0_11] : memref<1x128xf32, #tpu.memory_space<vmem>>, vector<1x128xf32>
      %19 = arith.mulf %12, %12 : vector<8x128xf32>
      %cst_12 = arith.constant dense<0.000000e+00> : vector<128xf32>
      %20 = vector.multi_reduction <add>, %19, %cst_12 [0] : vector<8x128xf32> to vector<128xf32>
      %21 = vector.shape_cast %20 : vector<128xf32> to vector<1x128xf32>
      %22 = arith.addf %18, %21 : vector<1x128xf32>
      %c0_13 = arith.constant 0 : index
      %c0_14 = arith.constant 0 : index
      %23 = vector.load %arg14[%c0_13, %c0_14] : memref<1x128xf32, #tpu.memory_space<vmem>>, vector<1x128xf32>
      tpu.vector_store %arg14[%c0_13, %c0_14], %22 {strides = array<i32>} : memref<1x128xf32, #tpu.memory_space<vmem>>, vector<1x128xf32>,
    } else {
    }
    %c1_i32 = arith.constant 1 : i32
    %3 = arith.cmpi eq, %arg0, %c1_i32 : i32
    %4 = arith.extui %3 : i1 to i32
    %c0_i32_1 = arith.constant 0 : i32
    %5 = arith.cmpi ne, %4, %c0_i32_1 : i32
    scf.if %5 {
      %c0_i32_3 = arith.constant 0 : i32
      %9 = arith.cmpi eq, %arg1, %c0_i32_3 : i32
      %10 = arith.extui %9 : i1 to i32
      %c0_i32_4 = arith.constant 0 : i32
      %11 = arith.cmpi ne, %10, %c0_i32_4 : i32
      scf.if %11 {
        %c0_23 = arith.constant 0 : index
        %c0_24 = arith.constant 0 : index
        %46 = vector.load %arg13[%c0_23, %c0_24] : memref<1x128xf32, #tpu.memory_space<vmem>>, vector<1x128xf32>
        %cst_25 = arith.constant 5.000000e-02 : f32
        %47 = vector.broadcast %cst_25 : f32 to vector<1x128xf32>
        %48 = arith.mulf %46, %47 : vector<1x128xf32>
        %c0_26 = arith.constant 0 : index
        %c0_27 = arith.constant 0 : index
        %49 = vector.load %arg14[%c0_26, %c0_27] : memref<1x128xf32, #tpu.memory_space<vmem>>, vector<1x128xf32>
        %cst_28 = arith.constant 5.000000e-02 : f32
        %50 = vector.broadcast %cst_28 : f32 to vector<1x128xf32>
        %51 = arith.mulf %49, %50 : vector<1x128xf32>
        %52 = arith.mulf %48, %48 : vector<1x128xf32>
        %53 = arith.subf %51, %52 : vector<1x128xf32>
        %cst_29 = arith.constant 0.000000e+00 : f32
        %54 = vector.broadcast %cst_29 : f32 to vector<1x128xf32>
        %55 = arith.maximumf %53, %54 : vector<1x128xf32>
        %c0_30 = arith.constant 0 : index
        %c0_31 = arith.constant 0 : index
        %56 = vector.load %arg3[%c0_30, %c0_31] : memref<1x128xf32, #tpu.memory_space<vmem>>, vector<1x128xf32>
        %cst_32 = arith.constant 9.99999974E-6 : f32
        %57 = vector.broadcast %cst_32 : f32 to vector<1x128xf32>
        %58 = arith.addf %55, %57 : vector<1x128xf32>
        %59 = math.rsqrt %58 : vector<1x128xf32>
        %60 = arith.mulf %56, %59 : vector<1x128xf32>
        %c0_33 = arith.constant 0 : index
        %c0_34 = arith.constant 0 : index
        %61 = vector.load %arg5[%c0_33, %c0_34] : memref<128x128xf32, #tpu.memory_space<vmem>>, vector<128x128xf32>
        %62 = vector.shape_cast %60 : vector<1x128xf32> to vector<1x128xf32>
        %63 = vector.broadcast %62 : vector<1x128xf32> to vector<128x128xf32>
        %64 = tpu.transpose %63, [1, 0] : vector<128x128xf32> -> vector<128x128xf32>
        %65 = arith.mulf %61, %64 : vector<128x128xf32>
        %66 = arith.truncf %65 : vector<128x128xf32> to vector<128x128xbf16>
        %c0_35 = arith.constant 0 : index
        %c0_36 = arith.constant 0 : index
        %67 = vector.load %arg15[%c0_35, %c0_36] : memref<128x128xbf16, #tpu.memory_space<vmem>>, vector<128x128xbf16>
        tpu.vector_store %arg15[%c0_35, %c0_36], %66 {strides = array<i32>} : memref<128x128xbf16, #tpu.memory_space<vmem>>, vector<128x128xbf16>,
        %c0_37 = arith.constant 0 : index
        %c0_38 = arith.constant 0 : index
        %68 = vector.load %arg4[%c0_37, %c0_38] : memref<1x128xf32, #tpu.memory_space<vmem>>, vector<1x128xf32>
        %69 = arith.mulf %48, %60 : vector<1x128xf32>
        %70 = arith.subf %68, %69 : vector<1x128xf32>
        %71 = vector.shape_cast %70 : vector<1x128xf32> to vector<1x128xf32>
        %72 = vector.broadcast %71 : vector<1x128xf32> to vector<128x128xf32>
        %73 = tpu.transpose %72, [1, 0] : vector<128x128xf32> -> vector<128x128xf32>
        %c0_39 = arith.constant 0 : index
        %c0_40 = arith.constant 0 : index
        %74 = vector.load %arg6[%c0_39, %c0_40] : memref<1x128xf32, #tpu.memory_space<vmem>>, vector<1x128xf32>
        %75 = arith.mulf %61, %73 : vector<128x128xf32>
        %cst_41 = arith.constant dense<0.000000e+00> : vector<128xf32>
        %76 = vector.multi_reduction <add>, %75, %cst_41 [0] : vector<128x128xf32> to vector<128xf32>
        %77 = vector.shape_cast %76 : vector<128xf32> to vector<1x128xf32>
        %78 = arith.addf %74, %77 : vector<1x128xf32>
        %c0_42 = arith.constant 0 : index
        %c0_43 = arith.constant 0 : index
        %79 = vector.load %arg16[%c0_42, %c0_43] : memref<1x128xf32, #tpu.memory_space<vmem>>, vector<1x128xf32>
        tpu.vector_store %arg16[%c0_42, %c0_43], %78 {strides = array<i32>} : memref<1x128xf32, #tpu.memory_space<vmem>>, vector<1x128xf32>,
        %cst_44 = arith.constant 0.000000e+00 : f32
        %80 = vector.broadcast %cst_44 : f32 to vector<1x128xf32>
        %c0_45 = arith.constant 0 : index
        %c0_46 = arith.constant 0 : index
        %81 = vector.load %arg13[%c0_45, %c0_46] : memref<1x128xf32, #tpu.memory_space<vmem>>, vector<1x128xf32>
        tpu.vector_store %arg13[%c0_45, %c0_46], %80 {strides = array<i32>} : memref<1x128xf32, #tpu.memory_space<vmem>>, vector<1x128xf32>,
        %cst_47 = arith.constant 0.000000e+00 : f32
        %82 = vector.broadcast %cst_47 : f32 to vector<1x128xf32>
        %c0_48 = arith.constant 0 : index
        %c0_49 = arith.constant 0 : index
        %83 = vector.load %arg14[%c0_48, %c0_49] : memref<1x128xf32, #tpu.memory_space<vmem>>, vector<1x128xf32>
        tpu.vector_store %arg14[%c0_48, %c0_49], %82 {strides = array<i32>} : memref<1x128xf32, #tpu.memory_space<vmem>>, vector<1x128xf32>,
      } else {
      }
      %c8_i32 = arith.constant 8 : i32
      %12 = arith.muli %arg1, %c8_i32 : i32
      %13 = tpu.assume_multiple %12, 8 : i32
      %c0 = arith.constant 0 : index
      %c0_5 = arith.constant 0 : index
      %14 = vector.load %arg2[%c0, %c0_5] : memref<8x128xf32, #tpu.memory_space<vmem>>, vector<8x128xf32>
      %15 = arith.truncf %14 : vector<8x128xf32> to vector<8x128xbf16>
      %c0_6 = arith.constant 0 : index
      %c0_7 = arith.constant 0 : index
      %16 = vector.load %arg15[%c0_6, %c0_7] : memref<128x128xbf16, #tpu.memory_space<vmem>>, vector<128x128xbf16>
      %cst = arith.constant dense<0.000000e+00> : vector<8x128xf32>
      %17 = tpu.matmul %15, %16, %cst {dimension_numbers = #tpu.dot_dimension_numbers<[1], [0], [0], [1], [0, 0, 1, 1], [], []>} : vector<8x128xbf16>, vector<128x128xbf16>, vector<8x128xf32> -> vector<8x128xf32>
      %c0_8 = arith.constant 0 : index
      %c0_9 = arith.constant 0 : index
      %18 = vector.load %arg16[%c0_8, %c0_9] : memref<1x128xf32, #tpu.memory_space<vmem>>, vector<1x128xf32>
      %19 = vector.broadcast %18 : vector<1x128xf32> to vector<8x128xf32>
      %20 = arith.addf %17, %19 : vector<8x128xf32>
      %21 = tpu.iota {dimensions = array<i32: 0>} : vector<8x1xi32>
      %22 = vector.broadcast %13 : i32 to vector<8x1xi32>
      %23 = arith.addi %22, %21 : vector<8x1xi32>
      %c20_i32 = arith.constant 20 : i32
      %24 = vector.broadcast %c20_i32 : i32 to vector<8x1xi32>
      %25 = arith.cmpi slt, %23, %24 : vector<8x1xi32>
      %cst_10 = arith.constant 0.000000e+00 : f32
      %26 = vector.shape_cast %25 : vector<8x1xi1> to vector<8x1xi1>
      %27 = vector.broadcast %26 : vector<8x1xi1> to vector<8x128xi1>
      %28 = vector.broadcast %cst_10 : f32 to vector<8x128xf32>
      %29 = arith.select %27, %20, %28 : vector<8x128xi1>, vector<8x128xf32>
      %c0_11 = arith.constant 0 : index
      %c0_12 = arith.constant 0 : index
      %30 = vector.load %arg13[%c0_11, %c0_12] : memref<1x128xf32, #tpu.memory_space<vmem>>, vector<1x128xf32>
      %cst_13 = arith.constant dense<0.000000e+00> : vector<128xf32>
      %31 = vector.multi_reduction <add>, %29, %cst_13 [0] : vector<8x128xf32> to vector<128xf32>
      %32 = vector.shape_cast %31 : vector<128xf32> to vector<1x128xf32>
      %33 = arith.addf %30, %32 : vector<1x128xf32>
      %c0_14 = arith.constant 0 : index
      %c0_15 = arith.constant 0 : index
      %34 = vector.load %arg13[%c0_14, %c0_15] : memref<1x128xf32, #tpu.memory_space<vmem>>, vector<1x128xf32>
      tpu.vector_store %arg13[%c0_14, %c0_15], %33 {strides = array<i32>} : memref<1x128xf32, #tpu.memory_space<vmem>>, vector<1x128xf32>,
      %c0_16 = arith.constant 0 : index
      %c0_17 = arith.constant 0 : index
      %35 = vector.load %arg14[%c0_16, %c0_17] : memref<1x128xf32, #tpu.memory_space<vmem>>, vector<1x128xf32>
      %36 = arith.mulf %29, %29 : vector<8x128xf32>
      %cst_18 = arith.constant dense<0.000000e+00> : vector<128xf32>
      %37 = vector.multi_reduction <add>, %36, %cst_18 [0] : vector<8x128xf32> to vector<128xf32>
      %38 = vector.shape_cast %37 : vector<128xf32> to vector<1x128xf32>
      %39 = arith.addf %35, %38 : vector<1x128xf32>
      %c0_19 = arith.constant 0 : index
      %c0_20 = arith.constant 0 : index
      %40 = vector.load %arg14[%c0_19, %c0_20] : memref<1x128xf32, #tpu.memory_space<vmem>>, vector<1x128xf32>
      tpu.vector_store %arg14[%c0_19, %c0_20], %39 {strides = array<i32>} : memref<1x128xf32, #tpu.memory_space<vmem>>, vector<1x128xf32>,
      %41 = arith.truncf %29 : vector<8x128xf32> to vector<8x128xbf16>
      %c0_21 = arith.constant 0 : index
      %42 = arith.index_cast %13 : i32 to index
      %c0_22 = arith.constant 0 : index
      %43 = vector.load %arg12[%c0_21, %42, %c0_22] : memref<2x24x128xbf16, #tpu.memory_space<vmem>>, vector<1x8x128xbf16>
      %44 = vector.shape_cast %43 : vector<1x8x128xbf16> to vector<8x128xbf16>
      %45 = vector.shape_cast %41 : vector<8x128xbf16> to vector<1x8x128xbf16>
      tpu.vector_store %arg12[%c0_21, %42, %c0_22], %45 {strides = array<i32>} : memref<2x24x128xbf16, #tpu.memory_space<vmem>>, vector<1x8x128xbf16>,
    } else {
    }
    %c2_i32 = arith.constant 2 : i32
    %6 = arith.cmpi eq, %arg0, %c2_i32 : i32
    %7 = arith.extui %6 : i1 to i32
    %c0_i32_2 = arith.constant 0 : i32
    %8 = arith.cmpi ne, %7, %c0_i32_2 : i32
    scf.if %8 {
      %c0_i32_3 = arith.constant 0 : i32
      %9 = arith.cmpi eq, %arg1, %c0_i32_3 : i32
      %10 = arith.extui %9 : i1 to i32
      %c0_i32_4 = arith.constant 0 : i32
      %11 = arith.cmpi ne, %10, %c0_i32_4 : i32
      scf.if %11 {
        %c0_13 = arith.constant 0 : index
        %c0_14 = arith.constant 0 : index
        %32 = vector.load %arg13[%c0_13, %c0_14] : memref<1x128xf32, #tpu.memory_space<vmem>>, vector<1x128xf32>
        %cst_15 = arith.constant 5.000000e-02 : f32
        %33 = vector.broadcast %cst_15 : f32 to vector<1x128xf32>
        %34 = arith.mulf %32, %33 : vector<1x128xf32>
        %c0_16 = arith.constant 0 : index
        %c0_17 = arith.constant 0 : index
        %35 = vector.load %arg14[%c0_16, %c0_17] : memref<1x128xf32, #tpu.memory_space<vmem>>, vector<1x128xf32>
        %cst_18 = arith.constant 5.000000e-02 : f32
        %36 = vector.broadcast %cst_18 : f32 to vector<1x128xf32>
        %37 = arith.mulf %35, %36 : vector<1x128xf32>
        %38 = arith.mulf %34, %34 : vector<1x128xf32>
        %39 = arith.subf %37, %38 : vector<1x128xf32>
        %cst_19 = arith.constant 0.000000e+00 : f32
        %40 = vector.broadcast %cst_19 : f32 to vector<1x128xf32>
        %41 = arith.maximumf %39, %40 : vector<1x128xf32>
        %c0_20 = arith.constant 0 : index
        %c0_21 = arith.constant 0 : index
        %42 = vector.load %arg7[%c0_20, %c0_21] : memref<1x128xf32, #tpu.memory_space<vmem>>, vector<1x128xf32>
        %cst_22 = arith.constant 9.99999974E-6 : f32
        %43 = vector.broadcast %cst_22 : f32 to vector<1x128xf32>
        %44 = arith.addf %41, %43 : vector<1x128xf32>
        %45 = math.rsqrt %44 : vector<1x128xf32>
        %46 = arith.mulf %42, %45 : vector<1x128xf32>
        %c0_23 = arith.constant 0 : index
        %c0_24 = arith.constant 0 : index
        %47 = vector.load %arg9[%c0_23, %c0_24] : memref<128x128xf32, #tpu.memory_space<vmem>>, vector<128x128xf32>
        %48 = vector.shape_cast %46 : vector<1x128xf32> to vector<1x128xf32>
        %49 = vector.broadcast %48 : vector<1x128xf32> to vector<128x128xf32>
        %50 = tpu.transpose %49, [1, 0] : vector<128x128xf32> -> vector<128x128xf32>
        %51 = arith.mulf %47, %50 : vector<128x128xf32>
        %52 = arith.truncf %51 : vector<128x128xf32> to vector<128x128xbf16>
        %c0_25 = arith.constant 0 : index
        %c0_26 = arith.constant 0 : index
        %53 = vector.load %arg15[%c0_25, %c0_26] : memref<128x128xbf16, #tpu.memory_space<vmem>>, vector<128x128xbf16>
        tpu.vector_store %arg15[%c0_25, %c0_26], %52 {strides = array<i32>} : memref<128x128xbf16, #tpu.memory_space<vmem>>, vector<128x128xbf16>,
        %c0_27 = arith.constant 0 : index
        %c0_28 = arith.constant 0 : index
        %54 = vector.load %arg8[%c0_27, %c0_28] : memref<1x128xf32, #tpu.memory_space<vmem>>, vector<1x128xf32>
        %55 = arith.mulf %34, %46 : vector<1x128xf32>
        %56 = arith.subf %54, %55 : vector<1x128xf32>
        %57 = vector.shape_cast %56 : vector<1x128xf32> to vector<1x128xf32>
        %58 = vector.broadcast %57 : vector<1x128xf32> to vector<128x128xf32>
        %59 = tpu.transpose %58, [1, 0] : vector<128x128xf32> -> vector<128x128xf32>
        %c0_29 = arith.constant 0 : index
        %c0_30 = arith.constant 0 : index
        %60 = vector.load %arg10[%c0_29, %c0_30] : memref<1x128xf32, #tpu.memory_space<vmem>>, vector<1x128xf32>
        %61 = arith.mulf %47, %59 : vector<128x128xf32>
        %cst_31 = arith.constant dense<0.000000e+00> : vector<128xf32>
        %62 = vector.multi_reduction <add>, %61, %cst_31 [0] : vector<128x128xf32> to vector<128xf32>
        %63 = vector.shape_cast %62 : vector<128xf32> to vector<1x128xf32>
        %64 = arith.addf %60, %63 : vector<1x128xf32>
        %c0_32 = arith.constant 0 : index
        %c0_33 = arith.constant 0 : index
        %65 = vector.load %arg16[%c0_32, %c0_33] : memref<1x128xf32, #tpu.memory_space<vmem>>, vector<1x128xf32>
        tpu.vector_store %arg16[%c0_32, %c0_33], %64 {strides = array<i32>} : memref<1x128xf32, #tpu.memory_space<vmem>>, vector<1x128xf32>,
        %cst_34 = arith.constant 0.000000e+00 : f32
        %66 = vector.broadcast %cst_34 : f32 to vector<1x128xf32>
        %c0_35 = arith.constant 0 : index
        %c0_36 = arith.constant 0 : index
        %67 = vector.load %arg13[%c0_35, %c0_36] : memref<1x128xf32, #tpu.memory_space<vmem>>, vector<1x128xf32>
        tpu.vector_store %arg13[%c0_35, %c0_36], %66 {strides = array<i32>} : memref<1x128xf32, #tpu.memory_space<vmem>>, vector<1x128xf32>,
        %cst_37 = arith.constant 0.000000e+00 : f32
        %68 = vector.broadcast %cst_37 : f32 to vector<1x128xf32>
        %c0_38 = arith.constant 0 : index
        %c0_39 = arith.constant 0 : index
        %69 = vector.load %arg14[%c0_38, %c0_39] : memref<1x128xf32, #tpu.memory_space<vmem>>, vector<1x128xf32>
        tpu.vector_store %arg14[%c0_38, %c0_39], %68 {strides = array<i32>} : memref<1x128xf32, #tpu.memory_space<vmem>>, vector<1x128xf32>,
      } else {
      }
      %c8_i32 = arith.constant 8 : i32
      %12 = arith.muli %arg1, %c8_i32 : i32
      %13 = tpu.assume_multiple %12, 8 : i32
      %c0 = arith.constant 0 : index
      %14 = arith.index_cast %13 : i32 to index
      %c0_5 = arith.constant 0 : index
      %15 = vector.load %arg12[%c0, %14, %c0_5] : memref<2x24x128xbf16, #tpu.memory_space<vmem>>, vector<1x8x128xbf16>
      %16 = vector.shape_cast %15 : vector<1x8x128xbf16> to vector<8x128xbf16>
      %c0_6 = arith.constant 0 : index
      %c0_7 = arith.constant 0 : index
      %17 = vector.load %arg15[%c0_6, %c0_7] : memref<128x128xbf16, #tpu.memory_space<vmem>>, vector<128x128xbf16>
      %cst = arith.constant dense<0.000000e+00> : vector<8x128xf32>
      %18 = tpu.matmul %16, %17, %cst {dimension_numbers = #tpu.dot_dimension_numbers<[1], [0], [0], [1], [0, 0, 1, 1], [], []>} : vector<8x128xbf16>, vector<128x128xbf16>, vector<8x128xf32> -> vector<8x128xf32>
      %c0_8 = arith.constant 0 : index
      %c0_9 = arith.constant 0 : index
      %19 = vector.load %arg16[%c0_8, %c0_9] : memref<1x128xf32, #tpu.memory_space<vmem>>, vector<1x128xf32>
      %20 = vector.broadcast %19 : vector<1x128xf32> to vector<8x128xf32>
      %21 = arith.addf %18, %20 : vector<8x128xf32>
      %22 = tpu.iota {dimensions = array<i32: 0>} : vector<8x1xi32>
      %23 = vector.broadcast %13 : i32 to vector<8x1xi32>
      %24 = arith.addi %23, %22 : vector<8x1xi32>
      %c20_i32 = arith.constant 20 : i32
      %25 = vector.broadcast %c20_i32 : i32 to vector<8x1xi32>
      %26 = arith.cmpi slt, %24, %25 : vector<8x1xi32>
      %cst_10 = arith.constant 0.000000e+00 : f32
      %27 = vector.shape_cast %26 : vector<8x1xi1> to vector<8x1xi1>
      %28 = vector.broadcast %27 : vector<8x1xi1> to vector<8x128xi1>
      %29 = vector.broadcast %cst_10 : f32 to vector<8x128xf32>
      %30 = arith.select %28, %21, %29 : vector<8x128xi1>, vector<8x128xf32>
      %c0_11 = arith.constant 0 : index
      %c0_12 = arith.constant 0 : index
      %31 = vector.load %arg11[%c0_11, %c0_12] : memref<8x128xf32, #tpu.memory_space<vmem>>, vector<8x128xf32>
      tpu.vector_store %arg11[%c0_11, %c0_12], %30 {strides = array<i32>} : memref<8x128xf32, #tpu.memory_space<vmem>>, vector<8x128xf32>,
    } else {
    }
    return
  }
  func.func @transform_0(%arg0: i32, %arg1: i32) -> (i32, i32) {
    %c0_i32 = arith.constant 0 : i32
    %c0_i32_0 = arith.constant 0 : i32
    return %arg1, %c0_i32 : i32, i32
  }
  func.func @transform_1(%arg0: i32, %arg1: i32) -> (i32, i32) {
    %c0_i32 = arith.constant 0 : i32
    %c0_i32_0 = arith.constant 0 : i32
    %c0_i32_1 = arith.constant 0 : i32
    return %c0_i32, %c0_i32_0 : i32, i32
  }
  func.func @transform_2(%arg0: i32, %arg1: i32) -> (i32, i32) {
    %c0_i32 = arith.constant 0 : i32
    %c0_i32_0 = arith.constant 0 : i32
    %c0_i32_1 = arith.constant 0 : i32
    return %c0_i32, %c0_i32_0 : i32, i32
  }
  func.func @transform_3(%arg0: i32, %arg1: i32) -> (i32, i32) {
    %c0_i32 = arith.constant 0 : i32
    %c0_i32_0 = arith.constant 0 : i32
    %c0_i32_1 = arith.constant 0 : i32
    return %c0_i32, %c0_i32_0 : i32, i32
  }
  func.func @transform_4(%arg0: i32, %arg1: i32) -> (i32, i32) {
    %c0_i32 = arith.constant 0 : i32
    %c0_i32_0 = arith.constant 0 : i32
    %c0_i32_1 = arith.constant 0 : i32
    return %c0_i32, %c0_i32_0 : i32, i32
  }
  func.func @transform_5(%arg0: i32, %arg1: i32) -> (i32, i32) {
    %c0_i32 = arith.constant 0 : i32
    %c0_i32_0 = arith.constant 0 : i32
    %c0_i32_1 = arith.constant 0 : i32
    return %c0_i32, %c0_i32_0 : i32, i32
  }
  func.func @transform_6(%arg0: i32, %arg1: i32) -> (i32, i32) {
    %c0_i32 = arith.constant 0 : i32
    %c0_i32_0 = arith.constant 0 : i32
    %c0_i32_1 = arith.constant 0 : i32
    return %c0_i32, %c0_i32_0 : i32, i32
  }
  func.func @transform_7(%arg0: i32, %arg1: i32) -> (i32, i32) {
    %c0_i32 = arith.constant 0 : i32
    %c0_i32_0 = arith.constant 0 : i32
    %c0_i32_1 = arith.constant 0 : i32
    return %c0_i32, %c0_i32_0 : i32, i32
  }
  func.func @transform_8(%arg0: i32, %arg1: i32) -> (i32, i32) {
    %c0_i32 = arith.constant 0 : i32
    %c0_i32_0 = arith.constant 0 : i32
    %c0_i32_1 = arith.constant 0 : i32
    return %c0_i32, %c0_i32_0 : i32, i32
  }
  func.func @transform_9(%arg0: i32, %arg1: i32) -> (i32, i32) {
    %c0_i32 = arith.constant 0 : i32
    %c0_i32_0 = arith.constant 0 : i32
    return %arg1, %c0_i32 : i32, i32
  }
}

</mosaic_0001>

<bundles_post_ra>
// kernel: pre_encoder_forward.1
= control target key start
LH: loop header
LB: loop body
LE: loop exit
PB: predicated region body
PF: predicated region fallthrough
CT: control target
= control target key end

     0   :  { %s1203_s30 = smov 0   ;;  %s1205_s10 = smov 0   ;;  %s1389_s0 = inlined_call_operand.vmem [shape: f32[24,128], index: 0, kind: input, shape index: {}]   ;;  %s1390_s1 = inlined_call_operand.vmem [shape: f32[1,128], index: 1, kind: input, shape index: {}]   ;;  %s1391_s2 = inlined_call_operand.vmem [shape: f32[1,128], index: 2, kind: input, shape index: {}]   ;;  %s1392_s3 = inlined_call_operand.vmem [shape: f32[128,128], index: 3, kind: input, shape index: {}]   ;;  %s1393_s4 = inlined_call_operand.vmem [shape: f32[1,128], index: 4, kind: input, shape index: {}]   ;;  %s1394_s5 = inlined_call_operand.vmem [shape: f32[1,128], index: 5, kind: input, shape index: {}]   ;;  %s1395_s6 = inlined_call_operand.vmem [shape: f32[1,128], index: 6, kind: input, shape index: {}]   ;;  %s1396_s7 = inlined_call_operand.vmem [shape: f32[128,128], index: 7, kind: input, shape index: {}]   ;;  %s1397_s8 = inlined_call_operand.vmem [shape: f32[1,128], index: 8, kind: input, shape index: {}]   ;;  %s1398_s9 = inlined_call_operand.vmem [shape: f32[24,128], index: 9, kind: output, shape index: {}]  }
   0x1   :  { %s1207_s11 = smov 0   ;;  %s1209_s12 = smov 0  }
   0x2   :  { %s1211_s13 = smov 0  }
   0x3 LB: > { %s28_s14 = sadd.s32 1, %s1136_s11  ;;  %s31_s15 = sadd.s32 1, %s1140_s12  ;;  %s1144_s13 = sphi %s1211_s13, %s19_s13   ;;  %s1140_s12 = sphi %s1209_s12, %s1402_s12   ;;  %s1136_s11 = sphi %s1207_s11, %s1401_s11   ;;  %s1132_s10 = sphi %s1205_s10, %s1400_s10   ;;  %s1128_s30 = sphi %s1203_s30, %s1399_s30  }
   0x4   : > { %p29_p0 = scmp.ge.s32.totalorder %s28_s14, 3  ;;  %p980_p1 = scmp.ge.s32.totalorder %s1144_s13, 1 }
   0x5   : > { %p298_p2 = scmp.lt.s32.totalorder %s1144_s13, 10 }
   0x6   : > { %s1404_s14 = smov (%p29_p0, %s28_s14), 0  ;;  %s1406_s15 = smov (!%p29_p0, %s31_s15), %s1140_s12 }
   0x7   : > { %p299_p3 = pnand %p980_p1, %p298_p2  ;;  %p33_p4 = scmp.ge.s32.totalorder %s1406_s15, 3 }
   0x8   : > { %p332_p5 = scmp.lt.s32.totalorder (!%p299_p3), %s1128_s30, 2  ;;  %p983_p6 = scmp.ne.s32.totalorder (!%p299_p3), %s1132_s10, 0 }
   0x9   : > { %s1408_s15 = smov (%p33_p4, %s1406_s15), 0  ;;  %302 = sbr.rel (%p299_p3) target bundleno = 1057 (0x421), region = 56 }
  0x10   : > { %s333_s16 = scalar_select %p332_p5, %s1128_s30, 2 }
  0x11   : > { %344 = sbr.rel (%p983_p6) target bundleno = 49 (0x31), region = 60  ;;  %p984_p7 = scmp.ne.s32.totalorder (!%p983_p6), %s1128_s30, 0 }
  0x12   : > { %s981_s17 = sshll.u32 %s333_s16, 3 }
  0x13   : > { %s1242_s20 = scalar_lea.vmem %s1389_s0, %s981_s17  ;;  %s1247_s23 = scalar_lea.vmem %s1398_s9, %s981_s17 }
  0x18   : > { %348 = sbr.rel (%p984_p7) target bundleno = 31 (0x1f), region = 64  ;;  %v1146_v0 = vmov (!%p984_p7), 0.0  }
  0x19   : > { %349 = vst [vmem:[#allocation3] sm:$0x1] (!%p984_p7), %v1146_v0  ;;  %350 = vst [vmem:[#allocation4] sm:$0x1] (!%p984_p7), %v1146_v0 }
  0x1f PF: > { %v351_v1 = vld [vmem:[%s1242_s20] sm:$0xff] }
  0x20   : > { %v353_v2 = vrot.slane %v351_v1, 4  ;;  %v362_v3 = vmul.f32 %v351_v1, %v351_v1  ;;  %v352_v12 = vld [vmem:[#allocation3] sm:$0x1]  ;;  %v361_v15 = vld [vmem:[#allocation4] sm:$0x1] }
  0x22   : > { %v354_v4 = vadd.f32 %v353_v2, %v351_v1  ;;  %v363_v5 = vrot.slane %v362_v3, 4 }
  0x24   : > { %v355_v6 = vrot.slane %v354_v4, 2  ;;  %v364_v7 = vadd.f32 %v363_v5, %v362_v3 }
  0x26   : > { %v356_v8 = vadd.f32 %v355_v6, %v354_v4  ;;  %v365_v9 = vrot.slane %v364_v7, 2 }
  0x28   : > { %v357_v10 = vrot.slane %v356_v8, 1  ;;  %v366_v11 = vadd.f32 %v365_v9, %v364_v7 }
  0x2a   : > { %v358_v13 = vadd.f32 %v357_v10, %v356_v8  ;;  %v367_v14 = vrot.slane %v366_v11, 1 }
  0x2c   : > { %v359_v16 = vadd.f32 %v358_v13, %v352_v12  ;;  %v368_v17 = vadd.f32 %v367_v14, %v366_v11 }
  0x2e   : > { %360 = vst [vmem:[#allocation3] sm:$0x1] %v359_v16  ;;  %v369_v18 = vadd.f32 %v368_v17, %v361_v15 }
  0x30   : > { %370 = vst [vmem:[#allocation4] sm:$0x1] %v369_v18 }
  0x31 PF: > { %p985_p8 = scmp.ne.s32.totalorder %s1132_s10, 1 }
  0x32   : > { %p986_p9 = scmp.ne.s32.totalorder (!%p985_p8), %s1128_s30, 0 }
  0x33   : > { %374 = sbr.rel (%p985_p8) target bundleno = 561 (0x231), region = 68 }
  0x3a   : > { %378 = sbr.rel (%p986_p9) target bundleno = 296 (0x128), region = 72  ;;  %v379_v19 = vld [vmem:[#allocation3] sm:$0x1] (!%p986_p9)  ;;  %v381_v20 = vld [vmem:[#allocation4] sm:$0x1] (!%p986_p9)  ;;  %v1147_v24 = vmov (!%p986_p9), 0.0   ;;  %v407_v28 = vlaneseq (!%p986_p9) }
  0x3b   : > { %v380_v21 = vmul.f32 (!%p986_p9), 0.05, %v379_v19  ;;  %v382_v22 = vmul.f32 (!%p986_p9), 0.05, %v381_v20  ;;  %557 = vst [vmem:[#allocation3] sm:$0x1] (!%p986_p9), %v1147_v24 }
  0x3c   : > { %558 = vst [vmem:[#allocation4] sm:$0x1] (!%p986_p9), %v1147_v24  ;;  %v408_v29 = vshrl.u32 (!%p986_p9), %v407_v28, 7  ;;  %v386_v30 = vld [vmem:[%s1390_s1] sm:$0x1] (!%p986_p9)  ;;  %v391_v43 = vld [vmem:[%s1392_s3 + $0x8] sm:$0xff] (!%p986_p9) }
  0x3d   : > { %v383_v23 = vmul.f32 (!%p986_p9), %v380_v21, %v380_v21  ;;  %v476_v34 = vld [vmem:[%s1391_s2] sm:$0x1] (!%p986_p9)  ;;  %v392_v49 = vld [vmem:[%s1392_s3 + $0x10] sm:$0xff] (!%p986_p9)  ;;  %v393_v52 = vld [vmem:[%s1392_s3 + $0x18] sm:$0xff] (!%p986_p9) }
  0x3e   : > { %v409_v33 = vsub.s32 (!%p986_p9), 0, %v408_v29  ;;  %v390_v40 = vld [vmem:[%s1392_s3] sm:$0xff] (!%p986_p9)  ;;  %v395_v61 = vld [vmem:[%s1392_s3 + $0x28] sm:$0xff] (!%p986_p9)  ;;  %v396_v3 = vld [vmem:[%s1392_s3 + $0x30] sm:$0xff] (!%p986_p9) }
  0x3f   : > { %v384_v25 = vsub.f32 (!%p986_p9), %v382_v22, %v383_v23  ;;  %v394_v58 = vld [vmem:[%s1392_s3 + $0x20] sm:$0xff] (!%p986_p9)  ;;  %v397_v6 = vld [vmem:[%s1392_s3 + $0x38] sm:$0xff] (!%p986_p9)  ;;  %v399_v16 = vld [vmem:[%s1392_s3 + $0x48] sm:$0xff] (!%p986_p9) }
  0x40   : > { %v398_v12 = vld [vmem:[%s1392_s3 + $0x40] sm:$0xff] (!%p986_p9)  ;;  %v400_v28 = vld [vmem:[%s1392_s3 + $0x50] sm:$0xff] (!%p986_p9) }
  0x41   : > { %v385_v26 = vmax.f32 %v384_v25, 0.0 }
  0x43   : > { %v387_v27 = vadd.f32 1e-05, %v385_v26 }
  0x45   : > { %1102 = vrsqrt.f32 %v387_v27 }
  0x4f   : > { %v1103_v31 = vpop.eup %1102 }
  0x50   : > { %v389_v32 = vmul.f32 %v1103_v31, %v386_v30 }
  0x52   : > { %v477_v35 = vmul.f32 %v389_v32, %v380_v21  ;;  %v410_v36 = vrot.slane %v389_v32, %v409_v33 }
  0x54   : > { %v478_v37 = vsub.f32 %v476_v34, %v477_v35  ;;  %412 = vxpose.xlu1.b32.start [1/16] %v410_v36, 128 }
  0x56   : > { %v483_v38 = vrot.slane %v478_v37, %v409_v33  ;;  %v401_v33 = vld [vmem:[%s1392_s3 + $0x58] sm:$0xff] }
  0x58   : > { %485 = vxpose.xlu0.b32.start [1/16] %v483_v38, 128  ;;  %413 = vxpose.xlu1.b32.cont [2/16] %v410_v36, 128 }
  0x5c   : > { %486 = vxpose.xlu0.b32.cont [2/16] %v483_v38, 128  ;;  %414 = vxpose.xlu1.b32.cont [3/16] %v410_v36, 128 }
  0x60   : > { %487 = vxpose.xlu0.b32.cont [3/16] %v483_v38, 128  ;;  %415 = vxpose.xlu1.b32.cont [4/16] %v410_v36, 128 }
  0x64   : > { %488 = vxpose.xlu0.b32.cont [4/16] %v483_v38, 128  ;;  %416 = vxpose.xlu1.b32.cont [5/16] %v410_v36, 128 }
  0x68   : > { %489 = vxpose.xlu0.b32.cont [5/16] %v483_v38, 128  ;;  %417 = vxpose.xlu1.b32.cont [6/16] %v410_v36, 128 }
  0x6c   : > { %490 = vxpose.xlu0.b32.cont [6/16] %v483_v38, 128  ;;  %418 = vxpose.xlu1.b32.cont [7/16] %v410_v36, 128 }
  0x70   : > { %491 = vxpose.xlu0.b32.cont [7/16] %v483_v38, 128  ;;  %419 = vxpose.xlu1.b32.cont [8/16] %v410_v36, 128 }
  0x74   : > { %492 = vxpose.xlu0.b32.cont [8/16] %v483_v38, 128  ;;  %420 = vxpose.xlu1.b32.cont [9/16] %v410_v36, 128 }
  0x78   : > { %493 = vxpose.xlu0.b32.cont [9/16] %v483_v38, 128  ;;  %421 = vxpose.xlu1.b32.cont [10/16] %v410_v36, 128 }
  0x7c   : > { %494 = vxpose.xlu0.b32.cont [10/16] %v483_v38, 128  ;;  %422 = vxpose.xlu1.b32.cont [11/16] %v410_v36, 128 }
  0x80   : > { %495 = vxpose.xlu0.b32.cont [11/16] %v483_v38, 128  ;;  %423 = vxpose.xlu1.b32.cont [12/16] %v410_v36, 128 }
  0x84   : > { %496 = vxpose.xlu0.b32.cont [12/16] %v483_v38, 128  ;;  %424 = vxpose.xlu1.b32.cont [13/16] %v410_v36, 128 }
  0x88   : > { %497 = vxpose.xlu0.b32.cont [13/16] %v483_v38, 128  ;;  %425 = vxpose.xlu1.b32.cont [14/16] %v410_v36, 128 }
  0x8c   : > { %498 = vxpose.xlu0.b32.cont [14/16] %v483_v38, 128  ;;  %426 = vxpose.xlu1.b32.cont [15/16] %v410_v36, 128 }
  0x90   : > { %499 = vxpose.xlu0.b32.cont [15/16] %v483_v38, 128  ;;  %427 = vxpose.xlu1.b32.end [16/16] %v410_v36, 128 }
  0x94   : > { %500 = vxpose.xlu0.b32.end [16/16] %v483_v38, 128 }
  0xd4   : > { %v428_v39 = vpop.trf.xlu1 }
  0xd5   : > { %v444_v41 = vmul.f32 %v428_v39, %v390_v40 }
  0xd8   : > { %v501_v42 = vpop.trf.xlu0  ;;  %v429_v44 = vpop.trf.xlu1 }
  0xd9   : > { %v445_v45 = vmul.f32 %v429_v44, %v391_v43  ;;  %v518_v18 = vmul.f32 %v501_v42, %v390_v40 }
  0xdb   : > { %v460_v46 = vpack.c.bf16 %v445_v45, %v444_v41  ;;  %v402_v45 = vld [vmem:[%s1392_s3 + $0x60] sm:$0xff] }
  0xdc   : > { %v502_v47 = vpop.trf.xlu0  ;;  %v430_v48 = vpop.trf.xlu1 }
  0xdd   : > { %468 = vst [vmem:[#allocation5] sm:$0xff] %v460_v46  ;;  %v446_v50 = vmul.f32 %v430_v48, %v392_v49  ;;  %v519_v13 = vmul.f32 %v502_v47, %v391_v43 }
  0xdf   : > { %v534_v21 = vadd.f32 %v519_v13, %v518_v18 }
  0xe0   : > { %v503_v51 = vpop.trf.xlu0  ;;  %v431_v53 = vpop.trf.xlu1 }
  0xe1   : > { %v447_v54 = vmul.f32 %v431_v53, %v393_v52  ;;  %v520_v19 = vmul.f32 %v503_v51, %v392_v49 }
  0xe3   : > { %v461_v55 = vpack.c.bf16 %v447_v54, %v446_v50  ;;  %v535_v26 = vadd.f32 %v534_v21, %v520_v19  ;;  %v403_v50 = vld [vmem:[%s1392_s3 + $0x68] sm:$0xff]  ;;  %v517_v19 = vld [vmem:[%s1393_s4] sm:$0x1] }
  0xe4   : > { %v504_v56 = vpop.trf.xlu0  ;;  %v432_v57 = vpop.trf.xlu1 }
  0xe5   : > { %469 = vst [vmem:[#allocation5 + $0x8] sm:$0xff] %v461_v55  ;;  %v448_v59 = vmul.f32 %v432_v57, %v394_v58  ;;  %v521_v22 = vmul.f32 %v504_v56, %v393_v52 }
  0xe7   : > { %v536_v29 = vadd.f32 %v535_v26, %v521_v22 }
  0xe8   : > { %v505_v60 = vpop.trf.xlu0  ;;  %v433_v62 = vpop.trf.xlu1 }
  0xe9   : > { %v449_v63 = vmul.f32 %v433_v62, %v395_v61  ;;  %v522_v27 = vmul.f32 %v505_v60, %v394_v58  ;;  %v404_v62 = vld [vmem:[%s1392_s3 + $0x70] sm:$0xff] }
  0xeb   : > { %v462_v0 = vpack.c.bf16 %v449_v63, %v448_v59  ;;  %v537_v35 = vadd.f32 %v536_v29, %v522_v27 }
  0xec   : > { %v506_v1 = vpop.trf.xlu0  ;;  %v434_v2 = vpop.trf.xlu1 }
  0xed   : > { %470 = vst [vmem:[#allocation5 + $0x10] sm:$0xff] %v462_v0  ;;  %v450_v4 = vmul.f32 %v434_v2, %v396_v3  ;;  %v523_v30 = vmul.f32 %v506_v1, %v395_v61 }
  0xef   : > { %v538_v38 = vadd.f32 %v537_v35, %v523_v30 }
  0xf0   : > { %v507_v5 = vpop.trf.xlu0  ;;  %v435_v7 = vpop.trf.xlu1 }
  0xf1   : > { %v451_v8 = vmul.f32 %v435_v7, %v397_v6  ;;  %v524_v36 = vmul.f32 %v507_v5, %v396_v3  ;;  %v405_v3 = vld [vmem:[%s1392_s3 + $0x78] sm:$0xff] }
  0xf3   : > { %v463_v9 = vpack.c.bf16 %v451_v8, %v450_v4  ;;  %v539_v43 = vadd.f32 %v538_v38, %v524_v36 }
  0xf4   : > { %v508_v10 = vpop.trf.xlu0  ;;  %v436_v11 = vpop.trf.xlu1 }
  0xf5   : > { %471 = vst [vmem:[#allocation5 + $0x18] sm:$0xff] %v463_v9  ;;  %v452_v14 = vmul.f32 %v436_v11, %v398_v12  ;;  %v525_v39 = vmul.f32 %v508_v10, %v397_v6 }
  0xf7   : > { %v540_v46 = vadd.f32 %v539_v43, %v525_v39 }
  0xf8   : > { %v509_v15 = vpop.trf.xlu0  ;;  %v437_v17 = vpop.trf.xlu1 }
  0xf9   : > { %v453_v20 = vmul.f32 %v437_v17, %v399_v16  ;;  %v526_v44 = vmul.f32 %v509_v15, %v398_v12 }
  0xfb   : > { %v464_v23 = vpack.c.bf16 %v453_v20, %v452_v14  ;;  %v541_v52 = vadd.f32 %v540_v46, %v526_v44 }
  0xfc   : > { %v510_v24 = vpop.trf.xlu0  ;;  %v438_v25 = vpop.trf.xlu1 }
  0xfd   : > { %472 = vst [vmem:[#allocation5 + $0x20] sm:$0xff] %v464_v23  ;;  %v454_v31 = vmul.f32 %v438_v25, %v400_v28  ;;  %v527_v47 = vmul.f32 %v510_v24, %v399_v16 }
  0xff   : > { %v542_v55 = vadd.f32 %v541_v52, %v527_v47 }
 0x100   : > { %v511_v32 = vpop.trf.xlu0  ;;  %v439_v34 = vpop.trf.xlu1 }
 0x101   : > { %v455_v37 = vmul.f32 %v439_v34, %v401_v33  ;;  %v528_v53 = vmul.f32 %v511_v32, %v400_v28 }
 0x103   : > { %v465_v40 = vpack.c.bf16 %v455_v37, %v454_v31  ;;  %v543_v60 = vadd.f32 %v542_v55, %v528_v53 }
 0x104   : > { %v512_v41 = vpop.trf.xlu0  ;;  %v440_v42 = vpop.trf.xlu1 }
 0x105   : > { %473 = vst [vmem:[#allocation5 + $0x28] sm:$0xff] %v465_v40  ;;  %v456_v48 = vmul.f32 %v440_v42, %v402_v45  ;;  %v529_v56 = vmul.f32 %v512_v41, %v401_v33 }
 0x107   : > { %v544_v63 = vadd.f32 %v543_v60, %v529_v56 }
 0x108   : > { %v513_v49 = vpop.trf.xlu0  ;;  %v441_v51 = vpop.trf.xlu1 }
 0x109   : > { %v457_v54 = vmul.f32 %v441_v51, %v403_v50  ;;  %v530_v61 = vmul.f32 %v513_v49, %v402_v45 }
 0x10b   : > { %v466_v57 = vpack.c.bf16 %v457_v54, %v456_v48  ;;  %v545_v5 = vadd.f32 %v544_v63, %v530_v61 }
 0x10c   : > { %v514_v58 = vpop.trf.xlu0  ;;  %v442_v59 = vpop.trf.xlu1 }
 0x10d   : > { %474 = vst [vmem:[#allocation5 + $0x30] sm:$0xff] %v466_v57  ;;  %v531_v0 = vmul.f32 %v514_v58, %v403_v50  ;;  %v458_v1 = vmul.f32 %v442_v59, %v404_v62 }
 0x10f   : > { %v546_v8 = vadd.f32 %v545_v5, %v531_v0 }
 0x110   : > { %v515_v2 = vpop.trf.xlu0  ;;  %v443_v4 = vpop.trf.xlu1 }
 0x111   : > { %v532_v6 = vmul.f32 %v515_v2, %v404_v62  ;;  %v459_v7 = vmul.f32 %v443_v4, %v405_v3 }
 0x113   : > { %v467_v9 = vpack.c.bf16 %v459_v7, %v458_v1  ;;  %v547_v11 = vadd.f32 %v546_v8, %v532_v6 }
 0x114   : > { %v516_v10 = vpop.trf.xlu0 }
 0x115   : > { %v533_v12 = vmul.f32 %v516_v10, %v405_v3  ;;  %475 = vst [vmem:[#allocation5 + $0x38] sm:$0xff] %v467_v9 }
 0x117   : > { %v548_v13 = vadd.f32 %v547_v11, %v533_v12 }
 0x119   : > { %v549_v14 = vrot.slane %v548_v13, 4 }
 0x11b   : > { %v550_v15 = vadd.f32 %v549_v14, %v548_v13 }
 0x11d   : > { %v551_v16 = vrot.slane %v550_v15, 2 }
 0x11f   : > { %v552_v17 = vadd.f32 %v551_v16, %v550_v15 }
 0x121   : > { %v553_v18 = vrot.slane %v552_v17, 1 }
 0x123   : > { %v554_v20 = vadd.f32 %v553_v18, %v552_v17 }
 0x125   : > { %v555_v21 = vadd.f32 %v554_v20, %v517_v19 }
 0x127   : > { %556 = vst [vmem:[#allocation6] sm:$0x1] %v555_v21 }
 0x128 PF: > { %v562_v22 = vld [vmem:[#allocation5] sm:$0xff]  ;;  %v1148_v23 = vmov 0.0   ;;  %vm1149_vm0 = vmmov 0   ;;  %v563_v24 = vld [vmem:[#allocation5 + $0x8] sm:$0xff]  ;;  %v564_v25 = vld [vmem:[#allocation5 + $0x10] sm:$0xff]  ;;  %v617_v33 = vlaneseq  ;;  %s987_s26 = sshll.u32 %s1128_s30, 3 }
 0x129   : > { %1015 = vmatprep.subr.bf16.mxu0 %v1148_v23  ;;  %1031 = vmatprep.mubr.msk.bf16.mxu0 %vm1149_vm0, %v1148_v23  ;;  %v565_v26 = vld [vmem:[#allocation5 + $0x18] sm:$0xff]  ;;  %v566_v27 = vld [vmem:[#allocation5 + $0x20] sm:$0xff]  ;;  %v567_v28 = vld [vmem:[#allocation5 + $0x28] sm:$0xff]  ;;  %v619_v35 = vstv %s987_s26  ;;  %s645_s27 = sshra.s32 %s987_s26, 3 }
 0x12a   : > { %1016 = vmatpush3.bf16.msra.mxu0 %v562_v22  ;;  %v568_v29 = vld [vmem:[#allocation5 + $0x30] sm:$0xff]  ;;  %v560_v30 = vld [vmem:[%s1242_s20] sm:$0xff]  ;;  %v569_v31 = vld [vmem:[#allocation5 + $0x38] sm:$0xff]  ;;  %v618_v34 = vshrl.u32 %v617_v33, 7  ;;  %s989_s28 = sshll.u32 %s645_s27, 2 }
 0x12b   : > { %1017 = vmatprep.subr.bf16.mxu0 %v1148_v23  ;;  %v561_v32 = vpack.c.bf16 %v560_v30, %v560_v30  ;;  %s648_s20 = scalar_lea.vmem [#allocation2], %s989_s28  ;;  %v625_v55 = vld [vmem:[#allocation3] sm:$0x1]  ;;  %v634_v58 = vld [vmem:[#allocation4] sm:$0x1] }
 0x12c   : > { %v620_v36 = vadd.s32 %v619_v35, %v618_v34 }
 0x12e   : > { %1018 = vmatpush3.bf16.msra.mxu0 %v563_v24  ;;  %v988_v37 = vld [vmem:[#allocation6] ss:$0 sm:$0xff]  ;;  %vm621_vm1 = vcmp.lt.s32.totalorder %v620_v36, 20 }
 0x12f   : > { %1019 = vmatprep.subr.bf16.mxu0 %v1148_v23 }
 0x132   : > { %1020 = vmatpush3.bf16.msra.mxu0 %v564_v25 }
 0x133   : > { %1021 = vmatprep.subr.bf16.mxu0 %v1148_v23 }
 0x136   : > { %1022 = vmatpush3.bf16.msra.mxu0 %v565_v26 }
 0x137   : > { %1023 = vmatprep.subr.bf16.mxu0 %v1148_v23 }
 0x13a   : > { %1024 = vmatpush3.bf16.msra.mxu0 %v566_v27 }
 0x13b   : > { %1025 = vmatprep.subr.bf16.mxu0 %v1148_v23 }
 0x13e   : > { %1026 = vmatpush3.bf16.msra.mxu0 %v567_v28 }
 0x13f   : > { %1027 = vmatprep.subr.bf16.mxu0 %v1148_v23 }
 0x142   : > { %1028 = vmatpush3.bf16.msra.mxu0 %v568_v29 }
 0x143   : > { %1029 = vmatprep.subr.bf16.mxu0 %v1148_v23 }
 0x146   : > { %1030 = vmatpush3.bf16.msra.mxu0 %v569_v31 }
 0x149   : > { %1032 = vmatmul.mubr.bf16.vlgmr.msra.gmra.mrb[0].mxu0 %v561_v32 }
 0x21c   : > { %v611_v38 = vpop.f32.mrb[0].mxu0 }
 0x21d   : > { %v612_v39 = vadd.f32 %v988_v37, %v611_v38  ;;  %v1033_v40 = vpop.f32.mrb[1].mxu0 }
 0x21e   : > { %v614_v41 = vpop.f32.mrb[2].mxu0 }
 0x21f   : > { %v624_v42 = vsel %vm621_vm1, %v612_v39, 0.0  ;;  %v1034_v43 = vpop.f32.mrb[3].mxu0 }
 0x220   : > { %v626_v44 = vrot.slane %v624_v42, 4  ;;  %v635_v45 = vmul.f32 %v624_v42, %v624_v42  ;;  %v644_v46 = vpack.c.bf16 %v624_v42, %v624_v42 }
 0x222   : > { %v627_v47 = vadd.f32 %v626_v44, %v624_v42  ;;  %v636_v48 = vrot.slane %v635_v45, 4  ;;  %649 = vst [vmem:[%s648_s20] sm:$0xf] %v644_v46 }
 0x224   : > { %v628_v49 = vrot.slane %v627_v47, 2  ;;  %v637_v50 = vadd.f32 %v636_v48, %v635_v45 }
 0x226   : > { %v629_v51 = vadd.f32 %v628_v49, %v627_v47  ;;  %v638_v52 = vrot.slane %v637_v50, 2 }
 0x228   : > { %v630_v53 = vrot.slane %v629_v51, 1  ;;  %v639_v54 = vadd.f32 %v638_v52, %v637_v50 }
 0x22a   : > { %v631_v56 = vadd.f32 %v630_v53, %v629_v51  ;;  %v640_v57 = vrot.slane %v639_v54, 1 }
 0x22c   : > { %v632_v59 = vadd.f32 %v631_v56, %v625_v55  ;;  %v641_v60 = vadd.f32 %v640_v57, %v639_v54 }
 0x22e   : > { %633 = vst [vmem:[#allocation3] sm:$0x1] %v632_v59  ;;  %v642_v61 = vadd.f32 %v641_v60, %v634_v58 }
 0x230   : > { %643 = vst [vmem:[#allocation4] sm:$0x1] %v642_v61 }
 0x231 PF: > { %p990_p10 = scmp.ne.s32.totalorder %s1132_s10, 2 }
 0x232   : > { %p991_p11 = scmp.ne.s32.totalorder (!%p990_p10), %s1128_s30, 0 }
 0x233   : > { %653 = sbr.rel (%p990_p10) target bundleno = 1057 (0x421), region = 76 }
 0x23a   : > { %657 = sbr.rel (%p991_p11) target bundleno = 808 (0x328), region = 80  ;;  %v658_v62 = vld [vmem:[#allocation3] sm:$0x1] (!%p991_p11)  ;;  %v660_v63 = vld [vmem:[#allocation4] sm:$0x1] (!%p991_p11)  ;;  %v1150_v3 = vmov (!%p991_p11), 0.0   ;;  %v686_v7 = vlaneseq (!%p991_p11) }
 0x23b   : > { %v659_v0 = vmul.f32 (!%p991_p11), 0.05, %v658_v62  ;;  %v661_v1 = vmul.f32 (!%p991_p11), 0.05, %v660_v63  ;;  %836 = vst [vmem:[#allocation3] sm:$0x1] (!%p991_p11), %v1150_v3 }
 0x23c   : > { %837 = vst [vmem:[#allocation4] sm:$0x1] (!%p991_p11), %v1150_v3  ;;  %v687_v8 = vshrl.u32 (!%p991_p11), %v686_v7, 7  ;;  %v665_v9 = vld [vmem:[%s1394_s5] sm:$0x1] (!%p991_p11)  ;;  %v670_v22 = vld [vmem:[%s1396_s7 + $0x8] sm:$0xff] (!%p991_p11) }
 0x23d   : > { %v662_v2 = vmul.f32 (!%p991_p11), %v659_v0, %v659_v0  ;;  %v755_v13 = vld [vmem:[%s1395_s6] sm:$0x1] (!%p991_p11)  ;;  %v671_v28 = vld [vmem:[%s1396_s7 + $0x10] sm:$0xff] (!%p991_p11)  ;;  %v672_v31 = vld [vmem:[%s1396_s7 + $0x18] sm:$0xff] (!%p991_p11) }
 0x23e   : > { %v688_v12 = vsub.s32 (!%p991_p11), 0, %v687_v8  ;;  %v669_v19 = vld [vmem:[%s1396_s7] sm:$0xff] (!%p991_p11)  ;;  %v674_v40 = vld [vmem:[%s1396_s7 + $0x28] sm:$0xff] (!%p991_p11)  ;;  %v675_v46 = vld [vmem:[%s1396_s7 + $0x30] sm:$0xff] (!%p991_p11) }
 0x23f   : > { %v663_v4 = vsub.f32 (!%p991_p11), %v661_v1, %v662_v2  ;;  %v673_v37 = vld [vmem:[%s1396_s7 + $0x20] sm:$0xff] (!%p991_p11)  ;;  %v676_v49 = vld [vmem:[%s1396_s7 + $0x38] sm:$0xff] (!%p991_p11)  ;;  %v678_v59 = vld [vmem:[%s1396_s7 + $0x48] sm:$0xff] (!%p991_p11) }
 0x240   : > { %v677_v55 = vld [vmem:[%s1396_s7 + $0x40] sm:$0xff] (!%p991_p11)  ;;  %v679_v7 = vld [vmem:[%s1396_s7 + $0x50] sm:$0xff] (!%p991_p11) }
 0x241   : > { %v664_v5 = vmax.f32 %v663_v4, 0.0 }
 0x243   : > { %v666_v6 = vadd.f32 1e-05, %v664_v5 }
 0x245   : > { %1104 = vrsqrt.f32 %v666_v6 }
 0x24f   : > { %v1105_v10 = vpop.eup %1104 }
 0x250   : > { %v668_v11 = vmul.f32 %v1105_v10, %v665_v9 }
 0x252   : > { %v756_v14 = vmul.f32 %v668_v11, %v659_v0  ;;  %v689_v15 = vrot.slane %v668_v11, %v688_v12 }
 0x254   : > { %v757_v16 = vsub.f32 %v755_v13, %v756_v14  ;;  %691 = vxpose.xlu1.b32.start [1/16] %v689_v15, 128 }
 0x256   : > { %v762_v17 = vrot.slane %v757_v16, %v688_v12  ;;  %v680_v12 = vld [vmem:[%s1396_s7 + $0x58] sm:$0xff] }
 0x258   : > { %764 = vxpose.xlu0.b32.start [1/16] %v762_v17, 128  ;;  %692 = vxpose.xlu1.b32.cont [2/16] %v689_v15, 128 }
 0x25c   : > { %765 = vxpose.xlu0.b32.cont [2/16] %v762_v17, 128  ;;  %693 = vxpose.xlu1.b32.cont [3/16] %v689_v15, 128 }
 0x260   : > { %766 = vxpose.xlu0.b32.cont [3/16] %v762_v17, 128  ;;  %694 = vxpose.xlu1.b32.cont [4/16] %v689_v15, 128 }
 0x264   : > { %767 = vxpose.xlu0.b32.cont [4/16] %v762_v17, 128  ;;  %695 = vxpose.xlu1.b32.cont [5/16] %v689_v15, 128 }
 0x268   : > { %768 = vxpose.xlu0.b32.cont [5/16] %v762_v17, 128  ;;  %696 = vxpose.xlu1.b32.cont [6/16] %v689_v15, 128 }
 0x26c   : > { %769 = vxpose.xlu0.b32.cont [6/16] %v762_v17, 128  ;;  %697 = vxpose.xlu1.b32.cont [7/16] %v689_v15, 128 }
 0x270   : > { %770 = vxpose.xlu0.b32.cont [7/16] %v762_v17, 128  ;;  %698 = vxpose.xlu1.b32.cont [8/16] %v689_v15, 128 }
 0x274   : > { %771 = vxpose.xlu0.b32.cont [8/16] %v762_v17, 128  ;;  %699 = vxpose.xlu1.b32.cont [9/16] %v689_v15, 128 }
 0x278   : > { %772 = vxpose.xlu0.b32.cont [9/16] %v762_v17, 128  ;;  %700 = vxpose.xlu1.b32.cont [10/16] %v689_v15, 128 }
 0x27c   : > { %773 = vxpose.xlu0.b32.cont [10/16] %v762_v17, 128  ;;  %701 = vxpose.xlu1.b32.cont [11/16] %v689_v15, 128 }
 0x280   : > { %774 = vxpose.xlu0.b32.cont [11/16] %v762_v17, 128  ;;  %702 = vxpose.xlu1.b32.cont [12/16] %v689_v15, 128 }
 0x284   : > { %775 = vxpose.xlu0.b32.cont [12/16] %v762_v17, 128  ;;  %703 = vxpose.xlu1.b32.cont [13/16] %v689_v15, 128 }
 0x288   : > { %776 = vxpose.xlu0.b32.cont [13/16] %v762_v17, 128  ;;  %704 = vxpose.xlu1.b32.cont [14/16] %v689_v15, 128 }
 0x28c   : > { %777 = vxpose.xlu0.b32.cont [14/16] %v762_v17, 128  ;;  %705 = vxpose.xlu1.b32.cont [15/16] %v689_v15, 128 }
 0x290   : > { %778 = vxpose.xlu0.b32.cont [15/16] %v762_v17, 128  ;;  %706 = vxpose.xlu1.b32.end [16/16] %v689_v15, 128 }
 0x294   : > { %779 = vxpose.xlu0.b32.end [16/16] %v762_v17, 128 }
 0x2d4   : > { %v707_v18 = vpop.trf.xlu1 }
 0x2d5   : > { %v723_v20 = vmul.f32 %v707_v18, %v669_v19 }
 0x2d8   : > { %v780_v21 = vpop.trf.xlu0  ;;  %v708_v23 = vpop.trf.xlu1 }
 0x2d9   : > { %v724_v24 = vmul.f32 %v708_v23, %v670_v22  ;;  %v797_v61 = vmul.f32 %v780_v21, %v669_v19 }
 0x2db   : > { %v739_v25 = vpack.c.bf16 %v724_v24, %v723_v20  ;;  %v681_v24 = vld [vmem:[%s1396_s7 + $0x60] sm:$0xff] }
 0x2dc   : > { %v781_v26 = vpop.trf.xlu0  ;;  %v709_v27 = vpop.trf.xlu1 }
 0x2dd   : > { %747 = vst [vmem:[#allocation5] sm:$0xff] %v739_v25  ;;  %v725_v29 = vmul.f32 %v709_v27, %v671_v28  ;;  %v798_v56 = vmul.f32 %v781_v26, %v670_v22 }
 0x2df   : > { %v813_v0 = vadd.f32 %v798_v56, %v797_v61 }
 0x2e0   : > { %v782_v30 = vpop.trf.xlu0  ;;  %v710_v32 = vpop.trf.xlu1 }
 0x2e1   : > { %v726_v33 = vmul.f32 %v710_v32, %v672_v31  ;;  %v799_v62 = vmul.f32 %v782_v30, %v671_v28 }
 0x2e3   : > { %v740_v34 = vpack.c.bf16 %v726_v33, %v725_v29  ;;  %v814_v5 = vadd.f32 %v813_v0, %v799_v62  ;;  %v682_v29 = vld [vmem:[%s1396_s7 + $0x68] sm:$0xff]  ;;  %v796_v62 = vld [vmem:[%s1397_s8] sm:$0x1] }
 0x2e4   : > { %v783_v35 = vpop.trf.xlu0  ;;  %v711_v36 = vpop.trf.xlu1 }
 0x2e5   : > { %748 = vst [vmem:[#allocation5 + $0x8] sm:$0xff] %v740_v34  ;;  %v727_v38 = vmul.f32 %v711_v36, %v673_v37  ;;  %v800_v1 = vmul.f32 %v783_v35, %v672_v31 }
 0x2e7   : > { %v815_v8 = vadd.f32 %v814_v5, %v800_v1 }
 0x2e8   : > { %v784_v39 = vpop.trf.xlu0  ;;  %v712_v41 = vpop.trf.xlu1 }
 0x2e9   : > { %v728_v42 = vmul.f32 %v712_v41, %v674_v40  ;;  %v801_v6 = vmul.f32 %v784_v39, %v673_v37  ;;  %v683_v41 = vld [vmem:[%s1396_s7 + $0x70] sm:$0xff] }
 0x2eb   : > { %v741_v43 = vpack.c.bf16 %v728_v42, %v727_v38  ;;  %v816_v14 = vadd.f32 %v815_v8, %v801_v6 }
 0x2ec   : > { %v785_v44 = vpop.trf.xlu0  ;;  %v713_v45 = vpop.trf.xlu1 }
 0x2ed   : > { %749 = vst [vmem:[#allocation5 + $0x10] sm:$0xff] %v741_v43  ;;  %v729_v47 = vmul.f32 %v713_v45, %v675_v46  ;;  %v802_v9 = vmul.f32 %v785_v44, %v674_v40 }
 0x2ef   : > { %v817_v17 = vadd.f32 %v816_v14, %v802_v9 }
 0x2f0   : > { %v786_v48 = vpop.trf.xlu0  ;;  %v714_v50 = vpop.trf.xlu1 }
 0x2f1   : > { %v730_v51 = vmul.f32 %v714_v50, %v676_v49  ;;  %v803_v15 = vmul.f32 %v786_v48, %v675_v46  ;;  %v684_v46 = vld [vmem:[%s1396_s7 + $0x78] sm:$0xff] }
 0x2f3   : > { %v742_v52 = vpack.c.bf16 %v730_v51, %v729_v47  ;;  %v818_v22 = vadd.f32 %v817_v17, %v803_v15 }
 0x2f4   : > { %v787_v53 = vpop.trf.xlu0  ;;  %v715_v54 = vpop.trf.xlu1 }
 0x2f5   : > { %750 = vst [vmem:[#allocation5 + $0x18] sm:$0xff] %v742_v52  ;;  %v731_v57 = vmul.f32 %v715_v54, %v677_v55  ;;  %v804_v18 = vmul.f32 %v787_v53, %v676_v49 }
 0x2f7   : > { %v819_v25 = vadd.f32 %v818_v22, %v804_v18 }
 0x2f8   : > { %v788_v58 = vpop.trf.xlu0  ;;  %v716_v60 = vpop.trf.xlu1 }
 0x2f9   : > { %v732_v63 = vmul.f32 %v716_v60, %v678_v59  ;;  %v805_v23 = vmul.f32 %v788_v58, %v677_v55 }
 0x2fb   : > { %v743_v2 = vpack.c.bf16 %v732_v63, %v731_v57  ;;  %v820_v31 = vadd.f32 %v819_v25, %v805_v23 }
 0x2fc   : > { %v789_v3 = vpop.trf.xlu0  ;;  %v717_v4 = vpop.trf.xlu1 }
 0x2fd   : > { %751 = vst [vmem:[#allocation5 + $0x20] sm:$0xff] %v743_v2  ;;  %v733_v10 = vmul.f32 %v717_v4, %v679_v7  ;;  %v806_v26 = vmul.f32 %v789_v3, %v678_v59 }
 0x2ff   : > { %v821_v34 = vadd.f32 %v820_v31, %v806_v26 }
 0x300   : > { %v790_v11 = vpop.trf.xlu0  ;;  %v718_v13 = vpop.trf.xlu1 }
 0x301   : > { %v734_v16 = vmul.f32 %v718_v13, %v680_v12  ;;  %v807_v32 = vmul.f32 %v790_v11, %v679_v7 }
 0x303   : > { %v744_v19 = vpack.c.bf16 %v734_v16, %v733_v10  ;;  %v822_v39 = vadd.f32 %v821_v34, %v807_v32 }
 0x304   : > { %v791_v20 = vpop.trf.xlu0  ;;  %v719_v21 = vpop.trf.xlu1 }
 0x305   : > { %752 = vst [vmem:[#allocation5 + $0x28] sm:$0xff] %v744_v19  ;;  %v735_v27 = vmul.f32 %v719_v21, %v681_v24  ;;  %v808_v35 = vmul.f32 %v791_v20, %v680_v12 }
 0x307   : > { %v823_v42 = vadd.f32 %v822_v39, %v808_v35 }
 0x308   : > { %v792_v28 = vpop.trf.xlu0  ;;  %v720_v30 = vpop.trf.xlu1 }
 0x309   : > { %v736_v33 = vmul.f32 %v720_v30, %v682_v29  ;;  %v809_v40 = vmul.f32 %v792_v28, %v681_v24 }
 0x30b   : > { %v745_v36 = vpack.c.bf16 %v736_v33, %v735_v27  ;;  %v824_v48 = vadd.f32 %v823_v42, %v809_v40 }
 0x30c   : > { %v793_v37 = vpop.trf.xlu0  ;;  %v721_v38 = vpop.trf.xlu1 }
 0x30d   : > { %753 = vst [vmem:[#allocation5 + $0x30] sm:$0xff] %v745_v36  ;;  %v810_v43 = vmul.f32 %v793_v37, %v682_v29  ;;  %v737_v44 = vmul.f32 %v721_v38, %v683_v41 }
 0x30f   : > { %v825_v51 = vadd.f32 %v824_v48, %v810_v43 }
 0x310   : > { %v794_v45 = vpop.trf.xlu0  ;;  %v722_v47 = vpop.trf.xlu1 }
 0x311   : > { %v811_v49 = vmul.f32 %v794_v45, %v683_v41  ;;  %v738_v50 = vmul.f32 %v722_v47, %v684_v46 }
 0x313   : > { %v746_v52 = vpack.c.bf16 %v738_v50, %v737_v44  ;;  %v826_v54 = vadd.f32 %v825_v51, %v811_v49 }
 0x314   : > { %v795_v53 = vpop.trf.xlu0 }
 0x315   : > { %v812_v55 = vmul.f32 %v795_v53, %v684_v46  ;;  %754 = vst [vmem:[#allocation5 + $0x38] sm:$0xff] %v746_v52 }
 0x317   : > { %v827_v56 = vadd.f32 %v826_v54, %v812_v55 }
 0x319   : > { %v828_v57 = vrot.slane %v827_v56, 4 }
 0x31b   : > { %v829_v58 = vadd.f32 %v828_v57, %v827_v56 }
 0x31d   : > { %v830_v59 = vrot.slane %v829_v58, 2 }
 0x31f   : > { %v831_v60 = vadd.f32 %v830_v59, %v829_v58 }
 0x321   : > { %v832_v61 = vrot.slane %v831_v60, 1 }
 0x323   : > { %v833_v63 = vadd.f32 %v832_v61, %v831_v60 }
 0x325   : > { %v834_v0 = vadd.f32 %v833_v63, %v796_v62 }
 0x327   : > { %835 = vst [vmem:[#allocation6] sm:$0x1] %v834_v0 }
 0x328 PF: > { %v844_v1 = vld [vmem:[#allocation5] sm:$0xff]  ;;  %v1151_v2 = vmov 0.0   ;;  %vm1152_vm2 = vmmov 0   ;;  %v845_v3 = vld [vmem:[#allocation5 + $0x8] sm:$0xff]  ;;  %v846_v4 = vld [vmem:[#allocation5 + $0x10] sm:$0xff]  ;;  %s992_s26 = sshll.u32 %s1128_s30, 3  ;;  %v899_v11 = vlaneseq }
 0x329   : > { %1035 = vmatprep.subr.bf16.mxu0 %v1151_v2  ;;  %1051 = vmatprep.mubr.msk.bf16.mxu0 %vm1152_vm2, %v1151_v2  ;;  %v847_v5 = vld [vmem:[#allocation5 + $0x18] sm:$0xff]  ;;  %v848_v6 = vld [vmem:[#allocation5 + $0x20] sm:$0xff]  ;;  %v849_v7 = vld [vmem:[#allocation5 + $0x28] sm:$0xff]  ;;  %s839_s27 = sshra.s32 %s992_s26, 3  ;;  %v901_v13 = vstv %s992_s26 }
 0x32a   : > { %1036 = vmatpush3.bf16.msra.mxu0 %v844_v1  ;;  %v850_v8 = vld [vmem:[#allocation5 + $0x30] sm:$0xff]  ;;  %s993_s28 = sshll.u32 %s839_s27, 2  ;;  %v851_v9 = vld [vmem:[#allocation5 + $0x38] sm:$0xff]  ;;  %v900_v12 = vshrl.u32 %v899_v11, 7 }
 0x32b   : > { %1037 = vmatprep.subr.bf16.mxu0 %v1151_v2  ;;  %s842_s20 = scalar_lea.vmem [#allocation2], %s993_s28 }
 0x32c   : > { %v843_v10 = vld [vmem:[%s842_s20] sm:$0xf]  ;;  %v902_v14 = vadd.s32 %v901_v13, %v900_v12 }
 0x32e   : > { %1038 = vmatpush3.bf16.msra.mxu0 %v845_v3  ;;  %v994_v15 = vld [vmem:[#allocation6] ss:$0 sm:$0xff]  ;;  %vm903_vm3 = vcmp.lt.s32.totalorder %v902_v14, 20 }
 0x32f   : > { %1039 = vmatprep.subr.bf16.mxu0 %v1151_v2 }
 0x332   : > { %1040 = vmatpush3.bf16.msra.mxu0 %v846_v4 }
 0x333   : > { %1041 = vmatprep.subr.bf16.mxu0 %v1151_v2 }
 0x336   : > { %1042 = vmatpush3.bf16.msra.mxu0 %v847_v5 }
 0x337   : > { %1043 = vmatprep.subr.bf16.mxu0 %v1151_v2 }
 0x33a   : > { %1044 = vmatpush3.bf16.msra.mxu0 %v848_v6 }
 0x33b   : > { %1045 = vmatprep.subr.bf16.mxu0 %v1151_v2 }
 0x33e   : > { %1046 = vmatpush3.bf16.msra.mxu0 %v849_v7 }
 0x33f   : > { %1047 = vmatprep.subr.bf16.mxu0 %v1151_v2 }
 0x342   : > { %1048 = vmatpush3.bf16.msra.mxu0 %v850_v8 }
 0x343   : > { %1049 = vmatprep.subr.bf16.mxu0 %v1151_v2 }
 0x346   : > { %1050 = vmatpush3.bf16.msra.mxu0 %v851_v9 }
 0x349   : > { %1052 = vmatmul.mubr.bf16.vlgmr.msra.gmra.mrb[0].mxu0 %v843_v10 }
 0x41c   : > { %v893_v16 = vpop.f32.mrb[0].mxu0 }
 0x41d   : > { %v894_v17 = vadd.f32 %v994_v15, %v893_v16  ;;  %v1053_v18 = vpop.f32.mrb[1].mxu0 }
 0x41e   : > { %v896_v19 = vpop.f32.mrb[2].mxu0 }
 0x41f   : > { %v906_v20 = vsel %vm903_vm3, %v894_v17, 0.0  ;;  %v1054_v21 = vpop.f32.mrb[3].mxu0 }
 0x420   : > { %907 = vst [vmem:[%s1247_s23] sm:$0xff] %v906_v20 }
 0x421 PF: > { %s19_s13 = sadd.s32 1, %s1144_s13   ;;  %s1399_s30 = smov %s1136_s11 }
 0x422   : > { %p16_p12 = scmp.ge.s32.totalorder %s19_s13, 11   ;;  %s1400_s10 = smov %s1140_s12 }
 0x423   : > { %s1401_s11 = smov %s1404_s14  ;;  %s1402_s12 = smov %s1408_s15 }
 0x424   :  { %18 = sbr.rel (!%p16_p12) target bundleno = 3 (0x3), region = 112 }

</bundles_post_ra>
